<compile_context>
chip_gen: v7x
topology: tpu7x:2x2x1
jax: 0.10.0
libtpu: 0.0.40
codegen_flags: <defaults>
</compile_context>

<pallas_src>
import functools

import jax
import jax.numpy as jnp
from jax.experimental import pallas as pl
from jax.experimental.pallas import tpu as pltpu


# ----------------------------------------------------------------------------
# Pallas kernel: transposed matmul  acc(Cout, tn) = W(Cout, K) @ colsT(K, tn)
# bf16 MXU inputs, f32 accumulation, fused bias + epilogue.
#   act == "none"        : bias only
#   act == "lrelu"       : LeakyReLU(negative_slope=slope)
#   act == "offset_mask" : rows <  n_keep -> identity  (offsets, i.e. cat(o1, o2))
#                          rows >= n_keep -> sigmoid   (modulation mask)
# ----------------------------------------------------------------------------
def _mmT_kernel(w_ref, x_ref, b_ref, o_ref, *, act, slope, n_keep):
    acc = jnp.dot(w_ref[...], x_ref[0], preferred_element_type=jnp.float32)
    acc = acc + b_ref[...]                                  # (Cout, tn) + (Cout, 1)
    if act == "lrelu":
        acc = jnp.where(acc >= 0.0, acc, acc * slope)
    elif act == "offset_mask":
        row = jax.lax.broadcasted_iota(jnp.int32, acc.shape, 0)
        acc = jnp.where(row < n_keep, acc, jax.nn.sigmoid(acc))
    o_ref[0] = acc.astype(o_ref.dtype)


def _pick_lane_tile(M, cap=1024):
    """Largest multiple-of-128 tile <= cap that divides M; else pad M to 128."""
    for tn in range(cap, 127, -128):
        if M % tn == 0:
            return tn, M
    return 128, pl.cdiv(M, 128) * 128


def matmulT_bias_act(wm, colsT, bias, *, act="none", slope=0.1, n_keep=0,
                     out_dtype=jnp.float32, lane_cap=1024):
    """wm:(Cout,K) @ colsT:(B,K,M) + bias with fused epilogue.  Lane-dense in M."""
    B, K, M = colsT.shape
    Cout = wm.shape[0]
    tn, Mp = _pick_lane_tile(M, lane_cap)
    if Mp != M:
        colsT = jnp.pad(colsT, ((0, 0), (0, 0), (0, Mp - M)))
    wm_b = wm.astype(jnp.bfloat16)
    cols_b = colsT.astype(jnp.bfloat16)
    bias2 = bias.astype(jnp.float32).reshape(Cout, 1)

    out = pl.pallas_call(
        functools.partial(_mmT_kernel, act=act, slope=slope, n_keep=n_keep),
        out_shape=jax.ShapeDtypeStruct((B, Cout, Mp), out_dtype),
        grid=(B, Mp // tn),
        in_specs=[
            pl.BlockSpec((Cout, K), lambda b, j: (0, 0)),      # resident weights
            pl.BlockSpec((1, K, tn), lambda b, j: (b, 0, j)),  # cols^T lane tile
            pl.BlockSpec((Cout, 1), lambda b, j: (0, 0)),      # bias
        ],
        out_specs=pl.BlockSpec((1, Cout, tn), lambda b, j: (b, 0, j)),
        compiler_params=pltpu.CompilerParams(
            dimension_semantics=("parallel", "parallel"),
            vmem_limit_bytes=32 * 1024 * 1024),
    )(wm_b, cols_b, bias2)
    if Mp != M:
        out = out[:, :, :M]
    return out


# ----------------------------------------------------------------------------
# 3x3 / stride 1 / pad 1 conv as a transposed (lane-dense) matmul.
# Columns are built directly from NCHW (row index = c*9 + kh*3 + kw), bf16,
# so the weight matrix is just weight.reshape(Cout, C*9) — zero transposes.
# ----------------------------------------------------------------------------
def _im2colT_3x3(x_nchw):
    # TODO(synk): fuse this im2col into the matmul kernel (halo'd activation
    # blocks via manual DMA) to avoid the 9x column expansion through HBM.
    x = x_nchw.astype(jnp.bfloat16)
    B, C, H, W = x.shape
    xp = jnp.pad(x, ((0, 0), (0, 0), (1, 1), (1, 1)))
    taps = [xp[:, :, kh:kh + H, kw:kw + W] for kh in range(3) for kw in range(3)]
    cols = jnp.stack(taps, axis=2)                           # (B, C, 9, H, W)
    return cols.reshape(B, C * 9, H * W)


def conv3x3(x_nchw, w, b, *, act="none", slope=0.1, n_keep=0,
            out_dtype=jnp.float32, lane_cap=1024):
    """3x3 conv, stride 1, pad 1, NCHW in/out.  w:(Cout,Cin,3,3), b:(Cout,)."""
    B, C, H, W = x_nchw.shape
    Cout = w.shape[0]
    colsT = _im2colT_3x3(x_nchw)                             # (B, 9C, HW)
    wm = w.reshape(Cout, C * 9)                              # column = c*9 + k
    outT = matmulT_bias_act(wm, colsT, b, act=act, slope=slope, n_keep=n_keep,
                            out_dtype=out_dtype, lane_cap=lane_cap)
    return outT.reshape(B, Cout, H, W)


# ----------------------------------------------------------------------------
# Modulated deformable conv v2 (stride 1, pad 1, dilation 1, groups 1).
# Bilinear sampling (data-dependent gather) stays in JAX; modulation + bilinear
# weights are folded into per-corner weights and accumulated directly into the
# (B, C*9, H*W) column tensor, which feeds the fused Pallas aggregation matmul.
# ----------------------------------------------------------------------------
def dcn_v2(x, off_mask, weight, bias, dg, negative_slope, lane_cap=1024):
    """x:(B,C,H,W) f32; off_mask:(B,3*dg*9,H,W) f32 with sigmoid already applied
    to the mask rows inside the conv_offset_mask kernel epilogue."""
    B, C, H, W = x.shape
    cpg = C // dg
    dgK = dg * 9
    f32 = jnp.float32

    off = off_mask[:, :2 * dgK].reshape(B, dg, 9, 2, H, W)
    dy = off[:, :, :, 0]                                     # (B,dg,9,H,W)
    dx = off[:, :, :, 1]
    m = off_mask[:, 2 * dgK:].reshape(B, dg, 9, H, W)

    kh = (jnp.arange(9) // 3).astype(f32)
    kw = (jnp.arange(9) % 3).astype(f32)
    base_y = jnp.arange(H, dtype=f32)
    base_x = jnp.arange(W, dtype=f32)
    py = base_y[None, None, None, :, None] - 1.0 + kh[None, None, :, None, None] + dy
    px = base_x[None, None, None, None, :] - 1.0 + kw[None, None, :, None, None] + dx

    y0 = jnp.floor(py)
    x0 = jnp.floor(px)
    ly = py - y0
    lx = px - x0
    hy = 1.0 - ly
    hx = 1.0 - lx

    xg = x.reshape(B, dg, cpg, H * W)

    # TODO(synk): the per-pixel bilinear gather is data-dependent; it is kept in
    # XLA (vmapped jnp.take).  A Pallas version would need an in-VMEM gather.
    def corner(yi, xi, wgt):
        valid = (yi >= 0) & (yi <= H - 1) & (xi >= 0) & (xi <= W - 1)
        yc = jnp.clip(yi, 0, H - 1).astype(jnp.int32)
        xc = jnp.clip(xi, 0, W - 1).astype(jnp.int32)
        idx = (yc * W + xc).reshape(B, dg, 9 * H * W)
        gather = jax.vmap(jax.vmap(lambda feat, ix: jnp.take(feat, ix, axis=1)))
        v = gather(xg, idx).reshape(B, dg, cpg, 9, H, W)
        return v * (wgt * valid.astype(f32))[:, :, None]

    acc = (corner(y0, x0, hy * hx * m)
           + corner(y0, x0 + 1.0, hy * lx * m)
           + corner(y0 + 1.0, x0, ly * hx * m)
           + corner(y0 + 1.0, x0 + 1.0, ly * lx * m))        # (B,dg,cpg,9,H,W)

    colsT = acc.reshape(B, C * 9, H * W)                     # row = c*9 + k
    wm = weight.reshape(weight.shape[0], C * 9)
    outT = matmulT_bias_act(wm, colsT, bias, act="lrelu", slope=negative_slope,
                            lane_cap=lane_cap)
    return outT.reshape(B, weight.shape[0], H, W)


# ----------------------------------------------------------------------------
# prealign forward
# ----------------------------------------------------------------------------
def prealign_forward(params, angular, center, dg):
    slope = 0.1
    x = jnp.concatenate([angular, center], axis=1)
    f = conv3x3(x, params["w1"], params["b1"], act="lrelu", slope=slope,
                out_dtype=jnp.bfloat16)
    f = conv3x3(f, params["w2"], params["b2"], act="lrelu", slope=slope,
                out_dtype=jnp.bfloat16)
    # DCN_sep conv_offset_mask with fused chunk/sigmoid epilogue:
    #   rows [0, 2*dg*9)   -> offsets (cat(o1, o2) is just this contiguous slice)
    #   rows [2*dg*9, ...) -> sigmoid -> modulation mask
    off_mask = conv3x3(f, params["w_om"], params["b_om"], act="offset_mask",
                       n_keep=2 * dg * 9, out_dtype=jnp.float32)
    fea = dcn_v2(angular, off_mask, params["w_dcn"], params["b_dcn"], dg,
                 negative_slope=slope)
    return fea


def init_params(key, nf, dg):
    ks = jax.random.split(key, 8)
    s = 0.05
    return {
        "w1": jax.random.normal(ks[0], (nf, nf * 2, 3, 3), jnp.float32) * s,
        "b1": jax.random.normal(ks[1], (nf,), jnp.float32) * s,
        "w2": jax.random.normal(ks[2], (nf, nf, 3, 3), jnp.float32) * s,
        "b2": jax.random.normal(ks[3], (nf,), jnp.float32) * s,
        "w_om": jax.random.normal(ks[4], (dg * 3 * 9, nf, 3, 3), jnp.float32) * s,
        "b_om": jax.random.normal(ks[5], (dg * 3 * 9,), jnp.float32) * s,
        "w_dcn": jax.random.normal(ks[6], (nf, nf, 3, 3), jnp.float32) * s,
        "b_dcn": jax.random.normal(ks[7], (nf,), jnp.float32) * s,
    }


if __name__ == "__main__":
    nf = 16          # feature channels (module default 64, kept small)
    dg = 4           # deformable groups (module default 8)
    B, H, W = 2, 16, 16

    key = jax.random.PRNGKey(0)
    k_par, k_ang, k_cen = jax.random.split(key, 3)
    params = init_params(k_par, nf, dg)
    angular = jax.random.normal(k_ang, (B, nf, H, W), jnp.float32)
    center = jax.random.normal(k_cen, (B, nf, H, W), jnp.float32)

    fwd = jax.jit(functools.partial(prealign_forward, dg=dg))
    fea = fwd(params, angular, center)
    jax.block_until_ready(fea)
    assert fea.shape == (B, nf, H, W) and fea.dtype == jnp.float32
    print("KERNEL_OK")
</pallas_src>

<mosaic_0001>
module attributes {stable_mosaic.version = 11 : i64} {
  func.func @_mmT_kernel(%arg0: i32, %arg1: i32, %arg2: memref<16x288xbf16, #tpu.memory_space<vmem>>, %arg3: memref<1x288x256xbf16, #tpu.memory_space<vmem>>, %arg4: memref<16x1xf32, #tpu.memory_space<vmem>>, %arg5: memref<1x16x256xbf16, #tpu.memory_space<vmem>>) attributes {dimension_semantics = [#tpu.dimension_semantics<parallel>, #tpu.dimension_semantics<parallel>], iteration_bounds = array<i64: 2, 1>, scalar_prefetch = 0 : i64, scratch_operands = 0 : i64, tpu.core_type = #tpu.core_type<tc>, window_params = [{pipeline_mode = #tpu.pipeline_mode<synchronous>, transform_indices = @transform_0, window_bounds = array<i64: 16, 288>}, {transform_indices = @transform_1, window_bounds = array<i64: 1, 288, 256>}, {pipeline_mode = #tpu.pipeline_mode<synchronous>, transform_indices = @transform_2, window_bounds = array<i64: 16, 1>}, {transform_indices = @transform_3, window_bounds = array<i64: 1, 16, 256>}]} {
    %c0 = arith.constant 0 : index
    %c0_0 = arith.constant 0 : index
    %0 = vector.load %arg2[%c0, %c0_0] : memref<16x288xbf16, #tpu.memory_space<vmem>>, vector<16x288xbf16>
    %c0_1 = arith.constant 0 : index
    %c0_2 = arith.constant 0 : index
    %c0_3 = arith.constant 0 : index
    %1 = vector.load %arg3[%c0_1, %c0_2, %c0_3] : memref<1x288x256xbf16, #tpu.memory_space<vmem>>, vector<1x288x256xbf16>
    %2 = vector.shape_cast %1 : vector<1x288x256xbf16> to vector<288x256xbf16>
    %cst = arith.constant dense<0.000000e+00> : vector<16x256xf32>
    %3 = tpu.matmul %0, %2, %cst {dimension_numbers = #tpu.dot_dimension_numbers<[1], [0], [0], [1], [0, 0, 1, 1], [], []>} : vector<16x288xbf16>, vector<288x256xbf16>, vector<16x256xf32> -> vector<16x256xf32>
    %c0_4 = arith.constant 0 : index
    %c0_5 = arith.constant 0 : index
    %4 = vector.load %arg4[%c0_4, %c0_5] : memref<16x1xf32, #tpu.memory_space<vmem>>, vector<16x1xf32>
    %5 = vector.broadcast %4 : vector<16x1xf32> to vector<16x256xf32>
    %6 = arith.addf %3, %5 : vector<16x256xf32>
    %cst_6 = arith.constant 0.000000e+00 : f32
    %7 = vector.broadcast %cst_6 : f32 to vector<16x256xf32>
    %8 = arith.cmpf oge, %6, %7 : vector<16x256xf32>
    %cst_7 = arith.constant 1.000000e-01 : f32
    %9 = vector.broadcast %cst_7 : f32 to vector<16x256xf32>
    %10 = arith.mulf %6, %9 : vector<16x256xf32>
    %11 = arith.select %8, %6, %10 : vector<16x256xi1>, vector<16x256xf32>
    %12 = arith.truncf %11 : vector<16x256xf32> to vector<16x256xbf16>
    %c0_8 = arith.constant 0 : index
    %c0_9 = arith.constant 0 : index
    %c0_10 = arith.constant 0 : index
    %13 = vector.load %arg5[%c0_8, %c0_9, %c0_10] : memref<1x16x256xbf16, #tpu.memory_space<vmem>>, vector<1x16x256xbf16>
    %14 = vector.shape_cast %13 : vector<1x16x256xbf16> to vector<16x256xbf16>
    %15 = vector.shape_cast %12 : vector<16x256xbf16> to vector<1x16x256xbf16>
    tpu.vector_store %arg5[%c0_8, %c0_9, %c0_10], %15 {strides = array<i32>} : memref<1x16x256xbf16, #tpu.memory_space<vmem>>, vector<1x16x256xbf16>,
    return
  }
  func.func @transform_0(%arg0: i32, %arg1: i32) -> (i32, i32) {
    %c0_i32 = arith.constant 0 : i32
    %c0_i32_0 = arith.constant 0 : i32
    %c0_i32_1 = arith.constant 0 : i32
    return %c0_i32, %c0_i32_0 : i32, i32
  }
  func.func @transform_1(%arg0: i32, %arg1: i32) -> (i32, i32, i32) {
    %c0_i32 = arith.constant 0 : i32
    %c0_i32_0 = arith.constant 0 : i32
    return %arg0, %c0_i32, %arg1 : i32, i32, i32
  }
  func.func @transform_2(%arg0: i32, %arg1: i32) -> (i32, i32) {
    %c0_i32 = arith.constant 0 : i32
    %c0_i32_0 = arith.constant 0 : i32
    %c0_i32_1 = arith.constant 0 : i32
    return %c0_i32, %c0_i32_0 : i32, i32
  }
  func.func @transform_3(%arg0: i32, %arg1: i32) -> (i32, i32, i32) {
    %c0_i32 = arith.constant 0 : i32
    %c0_i32_0 = arith.constant 0 : i32
    return %arg0, %c0_i32, %arg1 : i32, i32, i32
  }
}

module attributes {stable_mosaic.version = 11 : i64} {
  func.func @_mmT_kernel(%arg0: i32, %arg1: i32, %arg2: memref<16x144xbf16, #tpu.memory_space<vmem>>, %arg3: memref<1x144x256xbf16, #tpu.memory_space<vmem>>, %arg4: memref<16x1xf32, #tpu.memory_space<vmem>>, %arg5: memref<1x16x256xbf16, #tpu.memory_space<vmem>>) attributes {dimension_semantics = [#tpu.dimension_semantics<parallel>, #tpu.dimension_semantics<parallel>], iteration_bounds = array<i64: 2, 1>, scalar_prefetch = 0 : i64, scratch_operands = 0 : i64, tpu.core_type = #tpu.core_type<tc>, window_params = [{pipeline_mode = #tpu.pipeline_mode<synchronous>, transform_indices = @transform_0, window_bounds = array<i64: 16, 144>}, {transform_indices = @transform_1, window_bounds = array<i64: 1, 144, 256>}, {pipeline_mode = #tpu.pipeline_mode<synchronous>, transform_indices = @transform_2, window_bounds = array<i64: 16, 1>}, {transform_indices = @transform_3, window_bounds = array<i64: 1, 16, 256>}]} {
    %c0 = arith.constant 0 : index
    %c0_0 = arith.constant 0 : index
    %0 = vector.load %arg2[%c0, %c0_0] : memref<16x144xbf16, #tpu.memory_space<vmem>>, vector<16x144xbf16>
    %c0_1 = arith.constant 0 : index
    %c0_2 = arith.constant 0 : index
    %c0_3 = arith.constant 0 : index
    %1 = vector.load %arg3[%c0_1, %c0_2, %c0_3] : memref<1x144x256xbf16, #tpu.memory_space<vmem>>, vector<1x144x256xbf16>
    %2 = vector.shape_cast %1 : vector<1x144x256xbf16> to vector<144x256xbf16>
    %cst = arith.constant dense<0.000000e+00> : vector<16x256xf32>
    %3 = tpu.matmul %0, %2, %cst {dimension_numbers = #tpu.dot_dimension_numbers<[1], [0], [0], [1], [0, 0, 1, 1], [], []>} : vector<16x144xbf16>, vector<144x256xbf16>, vector<16x256xf32> -> vector<16x256xf32>
    %c0_4 = arith.constant 0 : index
    %c0_5 = arith.constant 0 : index
    %4 = vector.load %arg4[%c0_4, %c0_5] : memref<16x1xf32, #tpu.memory_space<vmem>>, vector<16x1xf32>
    %5 = vector.broadcast %4 : vector<16x1xf32> to vector<16x256xf32>
    %6 = arith.addf %3, %5 : vector<16x256xf32>
    %cst_6 = arith.constant 0.000000e+00 : f32
    %7 = vector.broadcast %cst_6 : f32 to vector<16x256xf32>
    %8 = arith.cmpf oge, %6, %7 : vector<16x256xf32>
    %cst_7 = arith.constant 1.000000e-01 : f32
    %9 = vector.broadcast %cst_7 : f32 to vector<16x256xf32>
    %10 = arith.mulf %6, %9 : vector<16x256xf32>
    %11 = arith.select %8, %6, %10 : vector<16x256xi1>, vector<16x256xf32>
    %12 = arith.truncf %11 : vector<16x256xf32> to vector<16x256xbf16>
    %c0_8 = arith.constant 0 : index
    %c0_9 = arith.constant 0 : index
    %c0_10 = arith.constant 0 : index
    %13 = vector.load %arg5[%c0_8, %c0_9, %c0_10] : memref<1x16x256xbf16, #tpu.memory_space<vmem>>, vector<1x16x256xbf16>
    %14 = vector.shape_cast %13 : vector<1x16x256xbf16> to vector<16x256xbf16>
    %15 = vector.shape_cast %12 : vector<16x256xbf16> to vector<1x16x256xbf16>
    tpu.vector_store %arg5[%c0_8, %c0_9, %c0_10], %15 {strides = array<i32>} : memref<1x16x256xbf16, #tpu.memory_space<vmem>>, vector<1x16x256xbf16>,
    return
  }
  func.func @transform_0(%arg0: i32, %arg1: i32) -> (i32, i32) {
    %c0_i32 = arith.constant 0 : i32
    %c0_i32_0 = arith.constant 0 : i32
    %c0_i32_1 = arith.constant 0 : i32
    return %c0_i32, %c0_i32_0 : i32, i32
  }
  func.func @transform_1(%arg0: i32, %arg1: i32) -> (i32, i32, i32) {
    %c0_i32 = arith.constant 0 : i32
    %c0_i32_0 = arith.constant 0 : i32
    return %arg0, %c0_i32, %arg1 : i32, i32, i32
  }
  func.func @transform_2(%arg0: i32, %arg1: i32) -> (i32, i32) {
    %c0_i32 = arith.constant 0 : i32
    %c0_i32_0 = arith.constant 0 : i32
    %c0_i32_1 = arith.constant 0 : i32
    return %c0_i32, %c0_i32_0 : i32, i32
  }
  func.func @transform_3(%arg0: i32, %arg1: i32) -> (i32, i32, i32) {
    %c0_i32 = arith.constant 0 : i32
    %c0_i32_0 = arith.constant 0 : i32
    return %arg0, %c0_i32, %arg1 : i32, i32, i32
  }
}

module attributes {stable_mosaic.version = 11 : i64} {
  func.func @_mmT_kernel(%arg0: i32, %arg1: i32, %arg2: memref<108x144xbf16, #tpu.memory_space<vmem>>, %arg3: memref<1x144x256xbf16, #tpu.memory_space<vmem>>, %arg4: memref<108x1xf32, #tpu.memory_space<vmem>>, %arg5: memref<1x108x256xf32, #tpu.memory_space<vmem>>) attributes {dimension_semantics = [#tpu.dimension_semantics<parallel>, #tpu.dimension_semantics<parallel>], iteration_bounds = array<i64: 2, 1>, scalar_prefetch = 0 : i64, scratch_operands = 0 : i64, tpu.core_type = #tpu.core_type<tc>, window_params = [{pipeline_mode = #tpu.pipeline_mode<synchronous>, transform_indices = @transform_0, window_bounds = array<i64: 108, 144>}, {transform_indices = @transform_1, window_bounds = array<i64: 1, 144, 256>}, {pipeline_mode = #tpu.pipeline_mode<synchronous>, transform_indices = @transform_2, window_bounds = array<i64: 108, 1>}, {transform_indices = @transform_3, window_bounds = array<i64: 1, 108, 256>}]} {
    %c0 = arith.constant 0 : index
    %c0_0 = arith.constant 0 : index
    %0 = vector.load %arg2[%c0, %c0_0] : memref<108x144xbf16, #tpu.memory_space<vmem>>, vector<108x144xbf16>
    %c0_1 = arith.constant 0 : index
    %c0_2 = arith.constant 0 : index
    %c0_3 = arith.constant 0 : index
    %1 = vector.load %arg3[%c0_1, %c0_2, %c0_3] : memref<1x144x256xbf16, #tpu.memory_space<vmem>>, vector<1x144x256xbf16>
    %2 = vector.shape_cast %1 : vector<1x144x256xbf16> to vector<144x256xbf16>
    %cst = arith.constant dense<0.000000e+00> : vector<108x256xf32>
    %3 = tpu.matmul %0, %2, %cst {dimension_numbers = #tpu.dot_dimension_numbers<[1], [0], [0], [1], [0, 0, 1, 1], [], []>} : vector<108x144xbf16>, vector<144x256xbf16>, vector<108x256xf32> -> vector<108x256xf32>
    %c0_4 = arith.constant 0 : index
    %c0_5 = arith.constant 0 : index
    %4 = vector.load %arg4[%c0_4, %c0_5] : memref<108x1xf32, #tpu.memory_space<vmem>>, vector<108x1xf32>
    %5 = vector.broadcast %4 : vector<108x1xf32> to vector<108x256xf32>
    %6 = arith.addf %3, %5 : vector<108x256xf32>
    %7 = tpu.iota {dimensions = array<i32: 0>} : vector<108x256xi32>
    %c72_i32 = arith.constant 72 : i32
    %8 = vector.broadcast %c72_i32 : i32 to vector<108x256xi32>
    %9 = arith.cmpi slt, %7, %8 : vector<108x256xi32>
    %10 = arith.negf %6 : vector<108x256xf32>
    %11 = math.exp %10 : vector<108x256xf32>
    %cst_6 = arith.constant 1.000000e+00 : f32
    %12 = vector.broadcast %cst_6 : f32 to vector<108x256xf32>
    %13 = arith.addf %12, %11 : vector<108x256xf32>
    %14 = arith.divf %12, %13 : vector<108x256xf32>
    %15 = arith.select %9, %6, %14 : vector<108x256xi1>, vector<108x256xf32>
    %c0_7 = arith.constant 0 : index
    %c0_8 = arith.constant 0 : index
    %c0_9 = arith.constant 0 : index
    %16 = vector.load %arg5[%c0_7, %c0_8, %c0_9] : memref<1x108x256xf32, #tpu.memory_space<vmem>>, vector<1x108x256xf32>
    %17 = vector.shape_cast %16 : vector<1x108x256xf32> to vector<108x256xf32>
    %18 = vector.shape_cast %15 : vector<108x256xf32> to vector<1x108x256xf32>
    tpu.vector_store %arg5[%c0_7, %c0_8, %c0_9], %18 {strides = array<i32>} : memref<1x108x256xf32, #tpu.memory_space<vmem>>, vector<1x108x256xf32>,
    return
  }
  func.func @transform_0(%arg0: i32, %arg1: i32) -> (i32, i32) {
    %c0_i32 = arith.constant 0 : i32
    %c0_i32_0 = arith.constant 0 : i32
    %c0_i32_1 = arith.constant 0 : i32
    return %c0_i32, %c0_i32_0 : i32, i32
  }
  func.func @transform_1(%arg0: i32, %arg1: i32) -> (i32, i32, i32) {
    %c0_i32 = arith.constant 0 : i32
    %c0_i32_0 = arith.constant 0 : i32
    return %arg0, %c0_i32, %arg1 : i32, i32, i32
  }
  func.func @transform_2(%arg0: i32, %arg1: i32) -> (i32, i32) {
    %c0_i32 = arith.constant 0 : i32
    %c0_i32_0 = arith.constant 0 : i32
    %c0_i32_1 = arith.constant 0 : i32
    return %c0_i32, %c0_i32_0 : i32, i32
  }
  func.func @transform_3(%arg0: i32, %arg1: i32) -> (i32, i32, i32) {
    %c0_i32 = arith.constant 0 : i32
    %c0_i32_0 = arith.constant 0 : i32
    return %arg0, %c0_i32, %arg1 : i32, i32, i32
  }
}

module attributes {stable_mosaic.version = 11 : i64} {
  func.func @_mmT_kernel(%arg0: i32, %arg1: i32, %arg2: memref<16x144xbf16, #tpu.memory_space<vmem>>, %arg3: memref<1x144x256xbf16, #tpu.memory_space<vmem>>, %arg4: memref<16x1xf32, #tpu.memory_space<vmem>>, %arg5: memref<1x16x256xf32, #tpu.memory_space<vmem>>) attributes {dimension_semantics = [#tpu.dimension_semantics<parallel>, #tpu.dimension_semantics<parallel>], iteration_bounds = array<i64: 2, 1>, scalar_prefetch = 0 : i64, scratch_operands = 0 : i64, tpu.core_type = #tpu.core_type<tc>, window_params = [{pipeline_mode = #tpu.pipeline_mode<synchronous>, transform_indices = @transform_0, window_bounds = array<i64: 16, 144>}, {transform_indices = @transform_1, window_bounds = array<i64: 1, 144, 256>}, {pipeline_mode = #tpu.pipeline_mode<synchronous>, transform_indices = @transform_2, window_bounds = array<i64: 16, 1>}, {transform_indices = @transform_3, window_bounds = array<i64: 1, 16, 256>}]} {
    %c0 = arith.constant 0 : index
    %c0_0 = arith.constant 0 : index
    %0 = vector.load %arg2[%c0, %c0_0] : memref<16x144xbf16, #tpu.memory_space<vmem>>, vector<16x144xbf16>
    %c0_1 = arith.constant 0 : index
    %c0_2 = arith.constant 0 : index
    %c0_3 = arith.constant 0 : index
    %1 = vector.load %arg3[%c0_1, %c0_2, %c0_3] : memref<1x144x256xbf16, #tpu.memory_space<vmem>>, vector<1x144x256xbf16>
    %2 = vector.shape_cast %1 : vector<1x144x256xbf16> to vector<144x256xbf16>
    %cst = arith.constant dense<0.000000e+00> : vector<16x256xf32>
    %3 = tpu.matmul %0, %2, %cst {dimension_numbers = #tpu.dot_dimension_numbers<[1], [0], [0], [1], [0, 0, 1, 1], [], []>} : vector<16x144xbf16>, vector<144x256xbf16>, vector<16x256xf32> -> vector<16x256xf32>
    %c0_4 = arith.constant 0 : index
    %c0_5 = arith.constant 0 : index
    %4 = vector.load %arg4[%c0_4, %c0_5] : memref<16x1xf32, #tpu.memory_space<vmem>>, vector<16x1xf32>
    %5 = vector.broadcast %4 : vector<16x1xf32> to vector<16x256xf32>
    %6 = arith.addf %3, %5 : vector<16x256xf32>
    %cst_6 = arith.constant 0.000000e+00 : f32
    %7 = vector.broadcast %cst_6 : f32 to vector<16x256xf32>
    %8 = arith.cmpf oge, %6, %7 : vector<16x256xf32>
    %cst_7 = arith.constant 1.000000e-01 : f32
    %9 = vector.broadcast %cst_7 : f32 to vector<16x256xf32>
    %10 = arith.mulf %6, %9 : vector<16x256xf32>
    %11 = arith.select %8, %6, %10 : vector<16x256xi1>, vector<16x256xf32>
    %c0_8 = arith.constant 0 : index
    %c0_9 = arith.constant 0 : index
    %c0_10 = arith.constant 0 : index
    %12 = vector.load %arg5[%c0_8, %c0_9, %c0_10] : memref<1x16x256xf32, #tpu.memory_space<vmem>>, vector<1x16x256xf32>
    %13 = vector.shape_cast %12 : vector<1x16x256xf32> to vector<16x256xf32>
    %14 = vector.shape_cast %11 : vector<16x256xf32> to vector<1x16x256xf32>
    tpu.vector_store %arg5[%c0_8, %c0_9, %c0_10], %14 {strides = array<i32>} : memref<1x16x256xf32, #tpu.memory_space<vmem>>, vector<1x16x256xf32>,
    return
  }
  func.func @transform_0(%arg0: i32, %arg1: i32) -> (i32, i32) {
    %c0_i32 = arith.constant 0 : i32
    %c0_i32_0 = arith.constant 0 : i32
    %c0_i32_1 = arith.constant 0 : i32
    return %c0_i32, %c0_i32_0 : i32, i32
  }
  func.func @transform_1(%arg0: i32, %arg1: i32) -> (i32, i32, i32) {
    %c0_i32 = arith.constant 0 : i32
    %c0_i32_0 = arith.constant 0 : i32
    return %arg0, %c0_i32, %arg1 : i32, i32, i32
  }
  func.func @transform_2(%arg0: i32, %arg1: i32) -> (i32, i32) {
    %c0_i32 = arith.constant 0 : i32
    %c0_i32_0 = arith.constant 0 : i32
    %c0_i32_1 = arith.constant 0 : i32
    return %c0_i32, %c0_i32_0 : i32, i32
  }
  func.func @transform_3(%arg0: i32, %arg1: i32) -> (i32, i32, i32) {
    %c0_i32 = arith.constant 0 : i32
    %c0_i32_0 = arith.constant 0 : i32
    return %arg0, %c0_i32, %arg1 : i32, i32, i32
  }
}

</mosaic_0001>

<bundles_post_ra>
// kernel: prealign_forward.4
= control target key start
LH: loop header
LB: loop body
LE: loop exit
PB: predicated region body
PF: predicated region fallthrough
CT: control target
= control target key end

     0   :  { %s854_s12 = smov 0   ;;  %s856_s13 = smov 0   ;;  %s944_s0 = inlined_call_operand.vmem [shape: bf16[16,288], index: 0, kind: input, shape index: {}]   ;;  %s945_s1 = inlined_call_operand.vmem [shape: bf16[2,288,256], index: 1, kind: input, shape index: {}]   ;;  %s946_s2 = inlined_call_operand.vmem [shape: f32[16,1], index: 2, kind: input, shape index: {}]   ;;  %s947_s3 = inlined_call_operand.vmem [shape: bf16[2,16,256], index: 3, kind: output, shape index: {}]  }
   0x1   :  { %s858_s14 = smov 0  }
   0x2 LB: > { %s25_s15 = sadd.s32 1, %s827_s13  ;;  %p665_p0 = scmp.ge.s32.totalorder %s831_s14, 1  ;;  %s831_s14 = sphi %s858_s14, %s13_s14   ;;  %s827_s13 = sphi %s856_s13, %s949_s13   ;;  %s823_s12 = sphi %s854_s12, %s948_s12  }
   0x3   : > { %p27_p1 = scmp.ge.s32.totalorder %s25_s15, 2  ;;  %p158_p2 = scmp.lt.s32.totalorder %s831_s14, 3 }
   0x5   : > { %s951_s15 = smov (%p27_p1, %s25_s15), 0  ;;  %p159_p3 = pnand %p665_p0, %p158_p2 }
   0x6   : > { %p191_p4 = scmp.lt.s32.totalorder (!%p159_p3), %s823_s12, 1  ;;  %v833_v0 = vmov (!%p159_p3), 0   ;;  %v807_v1 = vld [vmem:[%s944_s0 + $0x4] ss:$12 sps:$4 sm:$0xff] (!%p159_p3)   ;;  %v252_v3 = vld [vmem:[%s946_s2 + $0x8] sm:$0xff] (!%p159_p3)  ;;  %vm458_vm0 = vcmask (!%p159_p3), 261120  }
   0x7   : > { %162 = sbr.rel (%p159_p3) target bundleno = 308 (0x134), region = 32  ;;  %537 = vmatprep.mubr.bf16.mxu0 (!%p159_p3), %v833_v0  ;;  %750 = vset.pattern.permute.xlu0 (!%p159_p3), %v833_v0  ;;  %v251_v2 = vld [vmem:[%s946_s2] sm:$0xff] (!%p159_p3)  ;;  %v808_v23 = vld [vmem:[%s944_s0 + $0x8] ss:$12 sps:$4 sm:$0xff] (!%p159_p3)  }
   0x8   : > { %494 = vmatprep.mubr.bf16.mxu1 (!%p159_p3), %v807_v1  ;;  %255 = vperm.xlu0 (!%p159_p3), %750, %v251_v2   ;;  %v805_v41 = vld [vmem:[%s944_s0] ss:$12 sps:$4 sm:$0xff] (!%p159_p3)  }
   0xc   : > { %260 = vperm.xlu0 (!%p159_p3), %750, %v252_v3  }
   0xe   : > { %s953_s12 = smov (!%p191_p4, %s823_s12), 1 }
   0xf   : > { %s724_s20 = smul.u32 288, %s953_s12  ;;  %s713_s30 = sshll.u32 %s953_s12, 4 }
  0x10   : > { %s208_s6 = scalar_lea.vmem %s947_s3, %s713_s30 }
  0x11   : > { %s887_s25 = scalar_lea.vmem %s945_s1, %s724_s20 }
  0x12   : > { %v751_v4 = vld [vmem:[%s887_s25 + $0x4] ss:$8 sps:$4 sm:$0xff]   ;;  %v753_v5 = vld [vmem:[%s887_s25] ss:$8 sps:$4 sm:$0xff]   ;;  %v754_v6 = vld [vmem:[%s887_s25 + $0x14] ss:$8 sps:$4 sm:$0xff]  }
  0x13   : > { %462 = vmatprep.subr.bf16.mxu1 %v751_v4  ;;  %v756_v7 = vld [vmem:[%s887_s25 + $0x10] ss:$8 sps:$4 sm:$0xff]   ;;  %v757_v8 = vld [vmem:[%s887_s25 + $0x24] ss:$8 sps:$4 sm:$0xff]   ;;  %v759_v9 = vld [vmem:[%s887_s25 + $0x20] ss:$8 sps:$4 sm:$0xff]  }
  0x14   : > { %463 = vmatpush1.bf16.msra.mxu1 %v753_v5  ;;  %v760_v10 = vld [vmem:[%s887_s25 + $0x34] ss:$8 sps:$4 sm:$0xff]   ;;  %v762_v11 = vld [vmem:[%s887_s25 + $0x30] ss:$8 sps:$4 sm:$0xff]   ;;  %v763_v12 = vld [vmem:[%s887_s25 + $0x44] ss:$8 sps:$4 sm:$0xff]  }
  0x15   : > { %464 = vmatprep.subr.bf16.mxu1 %v754_v6  ;;  %v765_v13 = vld [vmem:[%s887_s25 + $0x40] ss:$8 sps:$4 sm:$0xff]   ;;  %v766_v14 = vld [vmem:[%s887_s25 + $0x54] ss:$8 sps:$4 sm:$0xff]   ;;  %v768_v15 = vld [vmem:[%s887_s25 + $0x50] ss:$8 sps:$4 sm:$0xff]  }
  0x16   : > { %v793_v16 = vld [vmem:[%s887_s25 + $0x104] ss:$8 sps:$4 sm:$0xff]   ;;  %v797_v18 = vld [vmem:[%s887_s25 + $0x100] ss:$8 sps:$4 sm:$0xff]   ;;  %v799_v19 = vld [vmem:[%s887_s25 + $0x114] ss:$8 sps:$4 sm:$0xff]  }
  0x17   : > { %v769_v17 = vld [vmem:[%s887_s25 + $0x64] ss:$8 sps:$4 sm:$0xff]   ;;  %505 = vmatprep.subr.bf16.mxu0 %v793_v16  ;;  %v771_v20 = vld [vmem:[%s887_s25 + $0x60] ss:$8 sps:$4 sm:$0xff]   ;;  %v803_v21 = vld [vmem:[%s887_s25 + $0x110] ss:$8 sps:$4 sm:$0xff]  }
  0x18   : > { %465 = vmatpush1.bf16.msra.mxu1 %v756_v7  ;;  %506 = vmatpush1.bf16.msra.mxu0 %v797_v18  ;;  %v772_v22 = vld [vmem:[%s887_s25 + $0x74] ss:$8 sps:$4 sm:$0xff]   ;;  %v774_v24 = vld [vmem:[%s887_s25 + $0x70] ss:$8 sps:$4 sm:$0xff]   ;;  %v775_v25 = vld [vmem:[%s887_s25 + $0x84] ss:$8 sps:$4 sm:$0xff]  }
  0x19   : > { %466 = vmatprep.subr.bf16.mxu1 %v757_v8  ;;  %507 = vmatprep.subr.bf16.mxu0 %v799_v19  ;;  %v777_v26 = vld [vmem:[%s887_s25 + $0x80] ss:$8 sps:$4 sm:$0xff]   ;;  %v778_v27 = vld [vmem:[%s887_s25 + $0x94] ss:$8 sps:$4 sm:$0xff]   ;;  %v780_v28 = vld [vmem:[%s887_s25 + $0x90] ss:$8 sps:$4 sm:$0xff]  }
  0x1a   : > { %v781_v29 = vld [vmem:[%s887_s25 + $0xa4] ss:$8 sps:$4 sm:$0xff]   ;;  %v783_v30 = vld [vmem:[%s887_s25 + $0xa0] ss:$8 sps:$4 sm:$0xff]   ;;  %v784_v31 = vld [vmem:[%s887_s25 + $0xb4] ss:$8 sps:$4 sm:$0xff]  }
  0x1b   : > { %v786_v32 = vld [vmem:[%s887_s25 + $0xb0] ss:$8 sps:$4 sm:$0xff]   ;;  %v787_v33 = vld [vmem:[%s887_s25 + $0xc4] ss:$8 sps:$4 sm:$0xff]   ;;  %v789_v34 = vld [vmem:[%s887_s25 + $0xc0] ss:$8 sps:$4 sm:$0xff]  }
  0x1c   : > { %467 = vmatpush1.bf16.msra.mxu1 %v759_v9  ;;  %508 = vmatpush1.bf16.msra.mxu0 %v803_v21  ;;  %v790_v35 = vld [vmem:[%s887_s25 + $0xd4] ss:$8 sps:$4 sm:$0xff]   ;;  %v792_v36 = vld [vmem:[%s887_s25 + $0xd0] ss:$8 sps:$4 sm:$0xff]   ;;  %v795_v37 = vld [vmem:[%s887_s25 + $0xe4] ss:$8 sps:$4 sm:$0xff]  }
  0x1d   : > { %468 = vmatprep.subr.bf16.mxu1 %v760_v10  ;;  %v798_v38 = vld [vmem:[%s887_s25 + $0xe0] ss:$8 sps:$4 sm:$0xff]   ;;  %v801_v39 = vld [vmem:[%s887_s25 + $0xf4] ss:$8 sps:$4 sm:$0xff]   ;;  %v804_v40 = vld [vmem:[%s887_s25 + $0xf0] ss:$8 sps:$4 sm:$0xff]  }
  0x1f   : > { %708 = vmatmul.mubr.msk.bf16.vlgmr.msra.gmra.mrb[0].mxu0 %vm458_vm0, %v808_v23 }
  0x20   : > { %469 = vmatpush1.bf16.msra.mxu1 %v762_v11 }
  0x21   : > { %470 = vmatprep.subr.bf16.mxu1 %v763_v12 }
  0x24   : > { %471 = vmatpush1.bf16.msra.mxu1 %v765_v13 }
  0x25   : > { %472 = vmatprep.subr.bf16.mxu1 %v766_v14 }
  0x28   : > { %473 = vmatpush1.bf16.msra.mxu1 %v768_v15 }
  0x29   : > { %474 = vmatprep.subr.bf16.mxu1 %v769_v17 }
  0x2c   : > { %475 = vmatpush1.bf16.msra.mxu1 %v771_v20 }
  0x2d   : > { %476 = vmatprep.subr.bf16.mxu1 %v772_v22 }
  0x30   : > { %477 = vmatpush1.bf16.msra.mxu1 %v774_v24 }
  0x31   : > { %478 = vmatprep.subr.bf16.mxu1 %v775_v25 }
  0x34   : > { %479 = vmatpush1.bf16.msra.mxu1 %v777_v26 }
  0x35   : > { %480 = vmatprep.subr.bf16.mxu1 %v778_v27 }
  0x38   : > { %481 = vmatpush1.bf16.msra.mxu1 %v780_v28 }
  0x39   : > { %482 = vmatprep.subr.bf16.mxu1 %v781_v29 }
  0x3c   : > { %483 = vmatpush1.bf16.msra.mxu1 %v783_v30 }
  0x3d   : > { %484 = vmatprep.subr.bf16.mxu1 %v784_v31 }
  0x40   : > { %485 = vmatpush1.bf16.msra.mxu1 %v786_v32 }
  0x41   : > { %486 = vmatprep.subr.bf16.mxu1 %v787_v33 }
  0x44   : > { %487 = vmatpush1.bf16.msra.mxu1 %v789_v34 }
  0x45   : > { %488 = vmatprep.subr.bf16.mxu1 %v790_v35 }
  0x48   : > { %489 = vmatpush1.bf16.msra.mxu1 %v792_v36 }
  0x49   : > { %490 = vmatprep.subr.bf16.mxu1 %v795_v37 }
  0x4c   : > { %491 = vmatpush1.bf16.msra.mxu1 %v798_v38 }
  0x4d   : > { %492 = vmatprep.subr.bf16.mxu1 %v801_v39 }
  0x50   : > { %493 = vmatpush1.bf16.msra.mxu1 %v804_v40 }
  0x53   : > { %495 = vmatmul.mubr.bf16.vlgmr.msra.gmra.mrb[0].mxu1 %v805_v41 }
  0x87   : > { %v256_v46 = vpop.permute.xlu0 %255 }
  0x8b   : > { %v261_v50 = vpop.permute.xlu0 %260 }
  0xf2   : > { %v539_v42 = vpop.f32.mrb[0].mxu0 }
  0xf3   : > { %v541_v43 = vpop.f32.mrb[1].mxu0 }
  0xf4   : > { %v543_v44 = vpop.f32.mrb[2].mxu0 }
  0xf5   : > { %v545_v45 = vpop.f32.mrb[3].mxu0 }
 0x126   : > { %v496_v47 = vpop.f32.mrb[0].mxu1 }
 0x127   : > { %v497_v48 = vadd.f32 %v496_v47, %v256_v46  ;;  %v498_v49 = vpop.f32.mrb[1].mxu1 }
 0x128   : > { %v499_v51 = vadd.f32 %v498_v49, %v256_v46  ;;  %v500_v52 = vpop.f32.mrb[2].mxu1 }
 0x129   : > { %v540_v53 = vadd.f32 %v539_v42, %v497_v48  ;;  %v501_v54 = vadd.f32 %v500_v52, %v261_v50  ;;  %v502_v55 = vpop.f32.mrb[3].mxu1 }
 0x12a   : > { %v542_v56 = vadd.f32 %v541_v43, %v499_v51  ;;  %v503_v57 = vadd.f32 %v502_v55, %v261_v50 }
 0x12b   : > { %vm548_vm1 = vcmp.ge.f32.partialorder %v540_v53, 0.0  ;;  %v552_v58 = vmul.f32 0.1, %v540_v53  ;;  %v544_v59 = vadd.f32 %v543_v44, %v501_v54 }
 0x12c   : > { %vm549_vm2 = vcmp.ge.f32.partialorder %v542_v56, 0.0  ;;  %v553_v60 = vmul.f32 0.1, %v542_v56  ;;  %v546_v61 = vadd.f32 %v545_v45, %v503_v57 }
 0x12d   : > { %v556_v62 = vsel %vm548_vm1, %v540_v53, %v552_v58  ;;  %vm550_vm3 = vcmp.ge.f32.partialorder %v544_v59, 0.0  ;;  %v554_v63 = vmul.f32 0.1, %v544_v59 }
 0x12e   : > { %v557_v0 = vsel %vm549_vm2, %v542_v56, %v553_v60  ;;  %vm551_vm4 = vcmp.ge.f32.partialorder %v546_v61, 0.0  ;;  %v555_v1 = vmul.f32 0.1, %v546_v61 }
 0x12f   : > { %v714_v2 = vpack.c.bf16 %v557_v0, %v556_v62  ;;  %v558_v3 = vsel %vm550_vm3, %v544_v59, %v554_v63 }
 0x130   : > { %v559_v4 = vsel %vm551_vm4, %v546_v61, %v555_v1 }
 0x131   : > { %572 = vst [vmem:[%s208_s6] sm:$0xff] %v714_v2  ;;  %v715_v5 = vpack.c.bf16 %v559_v4, %v558_v3 }
 0x133   : > { %573 = vst [vmem:[%s208_s6 + $0x8] sm:$0xff] %v715_v5 }
 0x134 PF: > { %s13_s14 = sadd.s32 1, %s831_s14   ;;  %s948_s12 = smov %s827_s13 }
 0x135   : > { %p10_p5 = scmp.ge.s32.totalorder %s13_s14, 4   ;;  %s949_s13 = smov %s951_s15 }
 0x137   :  { %12 = sbr.rel (!%p10_p5) target bundleno = 2 (0x2), region = 62 }

// kernel: prealign_forward.5
= control target key start
LH: loop header
LB: loop body
LE: loop exit
PB: predicated region body
PF: predicated region fallthrough
CT: control target
= control target key end

     0   :  { %s640_s12 = smov 0   ;;  %s642_s13 = smov 0   ;;  %s709_s0 = inlined_call_operand.vmem [shape: bf16[16,144], index: 0, kind: input, shape index: {}]   ;;  %s710_s1 = inlined_call_operand.vmem [shape: bf16[2,144,256], index: 1, kind: input, shape index: {}]   ;;  %s711_s2 = inlined_call_operand.vmem [shape: f32[16,1], index: 2, kind: input, shape index: {}]   ;;  %s712_s3 = inlined_call_operand.vmem [shape: bf16[2,16,256], index: 3, kind: output, shape index: {}]  }
   0x1   :  { %s644_s14 = smov 0  }
   0x2 LB: > { %s25_s15 = sadd.s32 1, %s613_s13  ;;  %p506_p0 = scmp.ge.s32.totalorder %s617_s14, 1  ;;  %s617_s14 = sphi %s644_s14, %s13_s14   ;;  %s613_s13 = sphi %s642_s13, %s714_s13   ;;  %s609_s12 = sphi %s640_s12, %s713_s12  }
   0x3   : > { %p27_p1 = scmp.ge.s32.totalorder %s25_s15, 2  ;;  %p158_p2 = scmp.lt.s32.totalorder %s617_s14, 3 }
   0x5   : > { %s716_s15 = smov (%p27_p1, %s25_s15), 0  ;;  %p159_p3 = pnand %p506_p0, %p158_p2 }
   0x6   : > { %p191_p4 = scmp.lt.s32.totalorder (!%p159_p3), %s609_s12, 1  ;;  %vm342_vm0 = vcmask (!%p159_p3), 130048   ;;  %v594_v0 = vld [vmem:[%s709_s0 + $0x4] ss:$8 sps:$4 sm:$0xff] (!%p159_p3)   ;;  %v619_v2 = vmov (!%p159_p3), 0  }
   0x7   : > { %162 = sbr.rel (%p159_p3) target bundleno = 278 (0x116), region = 32  ;;  %v231_v1 = vld [vmem:[%s711_s2] sm:$0xff] (!%p159_p3)  ;;  %564 = vset.pattern.permute.xlu0 (!%p159_p3), %v619_v2  ;;  %530 = vmatprep.mubr.msk.bf16.mxu0 (!%p159_p3), %vm342_vm0, %v594_v0  ;;  %v232_v3 = vld [vmem:[%s711_s2 + $0x8] sm:$0xff] (!%p159_p3) }
   0x8   : > { %235 = vperm.xlu0 (!%p159_p3), %564, %v231_v1   ;;  %v592_v22 = vld [vmem:[%s709_s0] ss:$8 sps:$4 sm:$0xff] (!%p159_p3)  }
   0xc   : > { %240 = vperm.xlu0 (!%p159_p3), %564, %v232_v3  }
   0xe   : > { %s718_s12 = smov (!%p191_p4, %s609_s12), 1 }
   0xf   : > { %s538_s20 = smul.u32 144, %s718_s12  ;;  %s535_s28 = sshll.u32 %s718_s12, 4 }
  0x10   : > { %s208_s4 = scalar_lea.vmem %s712_s3, %s535_s28 }
  0x11   : > { %s673_s25 = scalar_lea.vmem %s710_s1, %s538_s20 }
  0x12   : > { %v565_v4 = vld [vmem:[%s673_s25 + $0x4] ss:$8 sps:$4 sm:$0xff]   ;;  %v567_v5 = vld [vmem:[%s673_s25] ss:$8 sps:$4 sm:$0xff]   ;;  %v568_v6 = vld [vmem:[%s673_s25 + $0x14] ss:$8 sps:$4 sm:$0xff]  }
  0x13   : > { %346 = vmatprep.subr.bf16.mxu0 %v565_v4  ;;  %v570_v7 = vld [vmem:[%s673_s25 + $0x10] ss:$8 sps:$4 sm:$0xff]   ;;  %v571_v8 = vld [vmem:[%s673_s25 + $0x24] ss:$8 sps:$4 sm:$0xff]   ;;  %v573_v9 = vld [vmem:[%s673_s25 + $0x20] ss:$8 sps:$4 sm:$0xff]  }
  0x14   : > { %347 = vmatpush1.bf16.msra.mxu0 %v567_v5  ;;  %v574_v10 = vld [vmem:[%s673_s25 + $0x34] ss:$8 sps:$4 sm:$0xff]   ;;  %v576_v11 = vld [vmem:[%s673_s25 + $0x30] ss:$8 sps:$4 sm:$0xff]   ;;  %v577_v12 = vld [vmem:[%s673_s25 + $0x44] ss:$8 sps:$4 sm:$0xff]  }
  0x15   : > { %348 = vmatprep.subr.bf16.mxu0 %v568_v6  ;;  %v579_v13 = vld [vmem:[%s673_s25 + $0x40] ss:$8 sps:$4 sm:$0xff]   ;;  %v580_v14 = vld [vmem:[%s673_s25 + $0x54] ss:$8 sps:$4 sm:$0xff]   ;;  %v582_v15 = vld [vmem:[%s673_s25 + $0x50] ss:$8 sps:$4 sm:$0xff]  }
  0x16   : > { %v583_v16 = vld [vmem:[%s673_s25 + $0x64] ss:$8 sps:$4 sm:$0xff]   ;;  %v585_v17 = vld [vmem:[%s673_s25 + $0x60] ss:$8 sps:$4 sm:$0xff]   ;;  %v586_v18 = vld [vmem:[%s673_s25 + $0x74] ss:$8 sps:$4 sm:$0xff]  }
  0x17   : > { %v588_v19 = vld [vmem:[%s673_s25 + $0x70] ss:$8 sps:$4 sm:$0xff]   ;;  %v589_v20 = vld [vmem:[%s673_s25 + $0x84] ss:$8 sps:$4 sm:$0xff]   ;;  %v591_v21 = vld [vmem:[%s673_s25 + $0x80] ss:$8 sps:$4 sm:$0xff]  }
  0x18   : > { %349 = vmatpush1.bf16.msra.mxu0 %v570_v7 }
  0x19   : > { %350 = vmatprep.subr.bf16.mxu0 %v571_v8 }
  0x1c   : > { %351 = vmatpush1.bf16.msra.mxu0 %v573_v9 }
  0x1d   : > { %352 = vmatprep.subr.bf16.mxu0 %v574_v10 }
  0x20   : > { %353 = vmatpush1.bf16.msra.mxu0 %v576_v11 }
  0x21   : > { %354 = vmatprep.subr.bf16.mxu0 %v577_v12 }
  0x24   : > { %355 = vmatpush1.bf16.msra.mxu0 %v579_v13 }
  0x25   : > { %356 = vmatprep.subr.bf16.mxu0 %v580_v14 }
  0x28   : > { %357 = vmatpush1.bf16.msra.mxu0 %v582_v15 }
  0x29   : > { %358 = vmatprep.subr.bf16.mxu0 %v583_v16 }
  0x2c   : > { %359 = vmatpush1.bf16.msra.mxu0 %v585_v17 }
  0x2d   : > { %360 = vmatprep.subr.bf16.mxu0 %v586_v18 }
  0x30   : > { %361 = vmatpush1.bf16.msra.mxu0 %v588_v19 }
  0x31   : > { %362 = vmatprep.subr.bf16.mxu0 %v589_v20 }
  0x34   : > { %363 = vmatpush1.bf16.msra.mxu0 %v591_v21 }
  0x37   : > { %379 = vmatmul.mubr.bf16.vlgmr.msra.gmra.mrb[0].mxu0 %v592_v22 }
  0x87   : > { %v236_v23 = vpop.permute.xlu0 %235 }
  0x8b   : > { %v241_v27 = vpop.permute.xlu0 %240 }
 0x10a   : > { %v380_v24 = vpop.f32.mrb[0].mxu0 }
 0x10b   : > { %v381_v25 = vadd.f32 %v380_v24, %v236_v23  ;;  %v382_v26 = vpop.f32.mrb[1].mxu0 }
 0x10c   : > { %v383_v28 = vadd.f32 %v382_v26, %v236_v23  ;;  %v384_v29 = vpop.f32.mrb[2].mxu0 }
 0x10d   : > { %vm389_vm1 = vcmp.ge.f32.partialorder %v381_v25, 0.0  ;;  %v393_v30 = vmul.f32 0.1, %v381_v25  ;;  %v385_v31 = vadd.f32 %v384_v29, %v241_v27  ;;  %v386_v32 = vpop.f32.mrb[3].mxu0 }
 0x10e   : > { %vm390_vm2 = vcmp.ge.f32.partialorder %v383_v28, 0.0  ;;  %v394_v33 = vmul.f32 0.1, %v383_v28  ;;  %v387_v34 = vadd.f32 %v386_v32, %v241_v27 }
 0x10f   : > { %v397_v35 = vsel %vm389_vm1, %v381_v25, %v393_v30  ;;  %vm391_vm3 = vcmp.ge.f32.partialorder %v385_v31, 0.0  ;;  %v395_v36 = vmul.f32 0.1, %v385_v31 }
 0x110   : > { %v398_v37 = vsel %vm390_vm2, %v383_v28, %v394_v33  ;;  %vm392_vm4 = vcmp.ge.f32.partialorder %v387_v34, 0.0  ;;  %v396_v38 = vmul.f32 0.1, %v387_v34 }
 0x111   : > { %v536_v39 = vpack.c.bf16 %v398_v37, %v397_v35  ;;  %v399_v40 = vsel %vm391_vm3, %v385_v31, %v395_v36 }
 0x112   : > { %v400_v41 = vsel %vm392_vm4, %v387_v34, %v396_v38 }
 0x113   : > { %413 = vst [vmem:[%s208_s4] sm:$0xff] %v536_v39  ;;  %v537_v42 = vpack.c.bf16 %v400_v41, %v399_v40 }
 0x115   : > { %414 = vst [vmem:[%s208_s4 + $0x8] sm:$0xff] %v537_v42 }
 0x116 PF: > { %s13_s14 = sadd.s32 1, %s617_s14   ;;  %s713_s12 = smov %s613_s13 }
 0x117   : > { %p10_p5 = scmp.ge.s32.totalorder %s13_s14, 4   ;;  %s714_s13 = smov %s716_s15 }
 0x119   :  { %12 = sbr.rel (!%p10_p5) target bundleno = 2 (0x2), region = 62 }

// kernel: prealign_forward.6
= control target key start
LH: loop header
LB: loop body
LE: loop exit
PB: predicated region body
PF: predicated region fallthrough
CT: control target
= control target key end

     0   :  { %s1201_s12 = smov 0   ;;  %s1203_s13 = smov 0   ;;  %s1395_s0 = inlined_call_operand.vmem [shape: bf16[108,144], index: 0, kind: input, shape index: {}]   ;;  %s1396_s1 = inlined_call_operand.vmem [shape: bf16[2,144,256], index: 1, kind: input, shape index: {}]   ;;  %s1397_s2 = inlined_call_operand.vmem [shape: f32[108,1], index: 2, kind: input, shape index: {}]   ;;  %s1398_s3 = inlined_call_operand.vmem [shape: f32[2,108,256], index: 3, kind: output, shape index: {}]  }
   0x1   :  { %s1205_s14 = smov 0  }
   0x2 LB: > { %s25_s15 = sadd.s32 1, %s1174_s13  ;;  %p949_p0 = scmp.ge.s32.totalorder %s1178_s14, 1  ;;  %s1178_s14 = sphi %s1205_s14, %s13_s14   ;;  %s1174_s13 = sphi %s1203_s13, %s1400_s13   ;;  %s1170_s12 = sphi %s1201_s12, %s1399_s12  }
   0x3   : > { %p27_p1 = scmp.ge.s32.totalorder %s25_s15, 2  ;;  %p158_p2 = scmp.lt.s32.totalorder %s1178_s14, 3 }
   0x5   : > { %s1402_s15 = smov (%p27_p1, %s25_s15), 0  ;;  %p159_p3 = pnand %p949_p0, %p158_p2 }
   0x6   : > { %p191_p4 = scmp.lt.s32.totalorder (!%p159_p3), %s1170_s12, 1  ;;  %vm480_vm0 = vcmask (!%p159_p3), 130048   ;;  %v1097_v0 = vld [vmem:[%s1395_s0 + $0x4] ss:$8 sps:$4 sm:$0xff] (!%p159_p3)   ;;  %v1180_v2 = vmov (!%p159_p3), 0   ;;  %v254_v12 = vld [vmem:[%s1397_s2 + $0x58] sm:$0xff] (!%p159_p3) }
   0x7   : > { %162 = sbr.rel (%p159_p3) target bundleno = 316 (0x13c), region = 32  ;;  %v1100_v1 = vld [vmem:[%s1395_s0 + $0x44] ss:$8 sps:$4 sm:$0xff] (!%p159_p3)   ;;  %1067 = vset.pattern.permute.xlu1 (!%p159_p3), %v1180_v2  ;;  %1066 = vset.pattern.permute.xlu0 (!%p159_p3), %v1180_v2  ;;  %v253_v17 = vld [vmem:[%s1397_s2 + $0x50] sm:$0xff] (!%p159_p3)  ;;  %v256_v21 = vld [vmem:[%s1397_s2 + $0x68] sm:$0xf] (!%p159_p3) }
   0x8   : > { %984 = vmatprep.mubr.msk.bf16.mxu0 (!%p159_p3), %vm480_vm0, %v1097_v0  ;;  %988 = vmatprep.mubr.msk.bf16.mxu1 (!%p159_p3), %vm480_vm0, %v1100_v1  ;;  %v252_v14 = vld [vmem:[%s1397_s2 + $0x48] sm:$0xff] (!%p159_p3)  ;;  %v255_v16 = vld [vmem:[%s1397_s2 + $0x60] sm:$0xff] (!%p159_p3)  ;;  %v245_v24 = vld [vmem:[%s1397_s2 + $0x10] sm:$0xff] (!%p159_p3) }
   0x9   : > { %314 = vperm.xlu1 (!%p159_p3), %1067, %v254_v12   ;;  %304 = vperm.xlu0 (!%p159_p3), %1066, %v252_v14   ;;  %v243_v20 = vld [vmem:[%s1397_s2] sm:$0xff] (!%p159_p3)  ;;  %v244_v25 = vld [vmem:[%s1397_s2 + $0x8] sm:$0xff] (!%p159_p3)  ;;  %v246_v29 = vld [vmem:[%s1397_s2 + $0x18] sm:$0xff] (!%p159_p3) }
   0xa   : > { %v247_v28 = vld [vmem:[%s1397_s2 + $0x20] sm:$0xff] (!%p159_p3)  ;;  %v249_v33 = vld [vmem:[%s1397_s2 + $0x30] sm:$0xff] (!%p159_p3)  ;;  %v248_v34 = vld [vmem:[%s1397_s2 + $0x28] sm:$0xff] (!%p159_p3) }
   0xb   : > { %v1095_v31 = vld [vmem:[%s1395_s0] ss:$8 sps:$4 sm:$0xff] (!%p159_p3)   ;;  %v1101_v35 = vld [vmem:[%s1395_s0 + $0x14] ss:$8 sps:$4 sm:$0xff] (!%p159_p3)   ;;  %v1105_v39 = vld [vmem:[%s1395_s0 + $0x10] ss:$8 sps:$4 sm:$0xff] (!%p159_p3)  }
   0xc   : > { %v1098_v32 = vld [vmem:[%s1395_s0 + $0x40] ss:$8 sps:$4 sm:$0xff] (!%p159_p3)   ;;  %v1103_v36 = vld [vmem:[%s1395_s0 + $0x54] ss:$8 sps:$4 sm:$0xff] (!%p159_p3)   ;;  %v1106_v40 = vld [vmem:[%s1395_s0 + $0x50] ss:$8 sps:$4 sm:$0xff] (!%p159_p3)  }
   0xd   : > { %319 = vperm.xlu1 (!%p159_p3), %1067, %v255_v16   ;;  %309 = vperm.xlu0 (!%p159_p3), %1066, %v253_v17   ;;  %v251_v37 = vld [vmem:[%s1397_s2 + $0x40] sm:$0xff] (!%p159_p3)  ;;  %v250_v38 = vld [vmem:[%s1397_s2 + $0x38] sm:$0xff] (!%p159_p3) }
   0xe   : > { %s1404_s12 = smov (!%p191_p4, %s1170_s12), 1  ;;  %v1107_v41 = vld [vmem:[%s1395_s0 + $0x24] ss:$8 sps:$4 sm:$0xff]   ;;  %v1111_v43 = vld [vmem:[%s1395_s0 + $0x20] ss:$8 sps:$4 sm:$0xff]  }
   0xf   : > { %s1039_s20 = smul.u32 144, %s1404_s12  ;;  %v1109_v42 = vld [vmem:[%s1395_s0 + $0x64] ss:$8 sps:$4 sm:$0x3f]   ;;  %v1113_v45 = vld [vmem:[%s1395_s0 + $0x34] ss:$8 sps:$4 sm:$0xff]  }
  0x10   : > { %v1112_v44 = vld [vmem:[%s1395_s0 + $0x60] ss:$8 sps:$4 sm:$0x3f]   ;;  %v1115_v46 = vld [vmem:[%s1395_s0 + $0x30] ss:$8 sps:$4 sm:$0xff]   ;;  %s1040_s30 = smul.u32 224, %s1404_s12 }
  0x11   : > { %s1233_s23 = scalar_lea.vmem %s1396_s1, %s1039_s20  ;;  %259 = vperm.xlu1 %1067, %v243_v20   ;;  %324 = vperm.xlu0 %1066, %v256_v21  }
  0x12   : > { %v1068_v3 = vld [vmem:[%s1233_s23 + $0x4] ss:$8 sps:$4 sm:$0xff]   ;;  %v1070_v4 = vld [vmem:[%s1233_s23] ss:$8 sps:$4 sm:$0xff]   ;;  %v1071_v5 = vld [vmem:[%s1233_s23 + $0x14] ss:$8 sps:$4 sm:$0xff]   ;;  %s1348_s6 = scalar_lea.vmem %s1398_s3, %s1040_s30 }
  0x13   : > { %502 = vmatprep.subr.bf16.mxu0 %v1068_v3  ;;  %1021 = vmatprep.subr.bf16.mxu1 %v1068_v3  ;;  %v1073_v6 = vld [vmem:[%s1233_s23 + $0x10] ss:$8 sps:$4 sm:$0xff]   ;;  %v1074_v7 = vld [vmem:[%s1233_s23 + $0x24] ss:$8 sps:$4 sm:$0xff]   ;;  %v1076_v8 = vld [vmem:[%s1233_s23 + $0x20] ss:$8 sps:$4 sm:$0xff]  }
  0x14   : > { %503 = vmatpush1.bf16.msra.mxu0 %v1070_v4  ;;  %1030 = vmatpush1.bf16.msra.mxu1 %v1070_v4  ;;  %v1077_v9 = vld [vmem:[%s1233_s23 + $0x34] ss:$8 sps:$4 sm:$0xff]   ;;  %v1079_v10 = vld [vmem:[%s1233_s23 + $0x30] ss:$8 sps:$4 sm:$0xff]   ;;  %v1080_v11 = vld [vmem:[%s1233_s23 + $0x44] ss:$8 sps:$4 sm:$0xff]  }
  0x15   : > { %504 = vmatprep.subr.bf16.mxu0 %v1071_v5  ;;  %1022 = vmatprep.subr.bf16.mxu1 %v1071_v5  ;;  %v1082_v13 = vld [vmem:[%s1233_s23 + $0x40] ss:$8 sps:$4 sm:$0xff]   ;;  %v1083_v15 = vld [vmem:[%s1233_s23 + $0x54] ss:$8 sps:$4 sm:$0xff]   ;;  %v1085_v18 = vld [vmem:[%s1233_s23 + $0x50] ss:$8 sps:$4 sm:$0xff]  }
  0x16   : > { %v1086_v19 = vld [vmem:[%s1233_s23 + $0x64] ss:$8 sps:$4 sm:$0xff]   ;;  %v1088_v22 = vld [vmem:[%s1233_s23 + $0x60] ss:$8 sps:$4 sm:$0xff]   ;;  %v1089_v23 = vld [vmem:[%s1233_s23 + $0x74] ss:$8 sps:$4 sm:$0xff]   ;;  %269 = vperm.xlu1 %1067, %v245_v24   ;;  %264 = vperm.xlu0 %1066, %v244_v25  }
  0x17   : > { %v1091_v26 = vld [vmem:[%s1233_s23 + $0x70] ss:$8 sps:$4 sm:$0xff]   ;;  %v1092_v27 = vld [vmem:[%s1233_s23 + $0x84] ss:$8 sps:$4 sm:$0xff]   ;;  %v1094_v30 = vld [vmem:[%s1233_s23 + $0x80] ss:$8 sps:$4 sm:$0xff]  }
  0x18   : > { %505 = vmatpush1.bf16.msra.mxu0 %v1073_v6  ;;  %1031 = vmatpush1.bf16.msra.mxu1 %v1073_v6 }
  0x19   : > { %506 = vmatprep.subr.bf16.mxu0 %v1074_v7  ;;  %1023 = vmatprep.subr.bf16.mxu1 %v1074_v7 }
  0x1a   : > { %279 = vperm.xlu1 %1067, %v247_v28   ;;  %274 = vperm.xlu0 %1066, %v246_v29  }
  0x1c   : > { %507 = vmatpush1.bf16.msra.mxu0 %v1076_v8  ;;  %1032 = vmatpush1.bf16.msra.mxu1 %v1076_v8 }
  0x1d   : > { %508 = vmatprep.subr.bf16.mxu0 %v1077_v9  ;;  %1024 = vmatprep.subr.bf16.mxu1 %v1077_v9 }
  0x1e   : > { %289 = vperm.xlu1 %1067, %v249_v33   ;;  %284 = vperm.xlu0 %1066, %v248_v34  }
  0x20   : > { %509 = vmatpush1.bf16.msra.mxu0 %v1079_v10  ;;  %1033 = vmatpush1.bf16.msra.mxu1 %v1079_v10 }
  0x21   : > { %510 = vmatprep.subr.bf16.mxu0 %v1080_v11  ;;  %1025 = vmatprep.subr.bf16.mxu1 %v1080_v11 }
  0x22   : > { %299 = vperm.xlu1 %1067, %v251_v37   ;;  %294 = vperm.xlu0 %1066, %v250_v38  }
  0x24   : > { %511 = vmatpush1.bf16.msra.mxu0 %v1082_v13  ;;  %1034 = vmatpush1.bf16.msra.mxu1 %v1082_v13 }
  0x25   : > { %512 = vmatprep.subr.bf16.mxu0 %v1083_v15  ;;  %1026 = vmatprep.subr.bf16.mxu1 %v1083_v15 }
  0x28   : > { %513 = vmatpush1.bf16.msra.mxu0 %v1085_v18  ;;  %1035 = vmatpush1.bf16.msra.mxu1 %v1085_v18 }
  0x29   : > { %514 = vmatprep.subr.bf16.mxu0 %v1086_v19  ;;  %1027 = vmatprep.subr.bf16.mxu1 %v1086_v19 }
  0x2c   : > { %515 = vmatpush1.bf16.msra.mxu0 %v1088_v22  ;;  %1036 = vmatpush1.bf16.msra.mxu1 %v1088_v22 }
  0x2d   : > { %516 = vmatprep.subr.bf16.mxu0 %v1089_v23  ;;  %1028 = vmatprep.subr.bf16.mxu1 %v1089_v23 }
  0x30   : > { %517 = vmatpush1.bf16.msra.mxu0 %v1091_v26  ;;  %1037 = vmatpush1.bf16.msra.mxu1 %v1091_v26 }
  0x31   : > { %518 = vmatprep.subr.bf16.mxu0 %v1092_v27  ;;  %1029 = vmatprep.subr.bf16.mxu1 %v1092_v27 }
  0x34   : > { %519 = vmatpush1.bf16.msra.mxu0 %v1094_v30  ;;  %1038 = vmatpush1.bf16.msra.mxu1 %v1094_v30 }
  0x37   : > { %535 = vmatmul.mubr.bf16.vlgmr.msra.gmra.mrb[0].mxu0 %v1095_v31  ;;  %575 = vmatmul.mubr.bf16.vlgmr.msra.gmra.mrb[0].mxu1 %v1098_v32 }
  0x38   : > { %985 = vmatprep.mubr.msk.bf16.mxu0 %vm480_vm0, %v1101_v35  ;;  %989 = vmatprep.mubr.msk.bf16.mxu1 %vm480_vm0, %v1103_v36 }
  0x3f   : > { %545 = vmatmul.mubr.bf16.gmra.mrb[4].mxu0 %v1105_v39  ;;  %585 = vmatmul.mubr.bf16.gmra.mrb[4].mxu1 %v1106_v40 }
  0x40   : > { %986 = vmatprep.mubr.msk.bf16.mxu0 %vm480_vm0, %v1107_v41  ;;  %990 = vmatprep.mubr.msk.bf16.mxu1 %vm480_vm0, %v1109_v42 }
  0x47   : > { %555 = vmatmul.mubr.bf16.gmra.mrb[8].mxu0 %v1111_v43  ;;  %595 = vmatmul.mubr.bf16.gmra.mrb[8].mxu1 %v1112_v44 }
  0x48   : > { %987 = vmatprep.mubr.msk.bf16.mxu0 %vm480_vm0, %v1113_v45 }
  0x4f   : > { %565 = vmatmul.mubr.bf16.gmra.mrb[12].mxu0 %v1115_v46 }
  0x88   : > { %v315_v47 = vpop.permute.xlu1 %314  ;;  %v305_v51 = vpop.permute.xlu0 %304 }
  0x8c   : > { %v1336_v48 = vpop.permute.xlu1 %319  ;;  %v310_v53 = vpop.permute.xlu0 %309 }
  0x90   : > { %v260_v49 = vpop.permute.xlu1 %259  ;;  %v1342_v55 = vpop.permute.xlu0 %324 }
  0x95   : > { %v270_v50 = vpop.permute.xlu1 %269  ;;  %v265_v57 = vpop.permute.xlu0 %264 }
  0x99   : > { %v1338_v52 = vpop.permute.xlu1 %279  ;;  %v275_v12 = vpop.permute.xlu0 %274 }
  0x9d   : > { %v1340_v54 = vpop.permute.xlu1 %289  ;;  %v285_v33 = vpop.permute.xlu0 %284 }
  0xa1   : > { %v300_v56 = vpop.permute.xlu1 %299 }
 0x10a   : > { %v576_v58 = vpop.f32.mrb[0].mxu1  ;;  %v536_v59 = vpop.f32.mrb[0].mxu0 }
 0x10b   : > { %v577_v60 = vadd.f32 %v576_v58, %v300_v56  ;;  %v578_v61 = vpop.f32.mrb[1].mxu1  ;;  %v537_v62 = vadd.f32 %v536_v59, %v260_v49  ;;  %v538_v63 = vpop.f32.mrb[1].mxu0 }
 0x10c   : > { %v579_v0 = vadd.f32 %v578_v61, %v300_v56  ;;  %v580_v1 = vpop.f32.mrb[2].mxu1  ;;  %v539_v2 = vadd.f32 %v538_v63, %v260_v49  ;;  %v540_v3 = vpop.f32.mrb[2].mxu0 }
 0x10d   : > { %846 = vst [vmem:[%s1348_s6 + $0x80] sm:$0xff] %v577_v60  ;;  %v581_v4 = vadd.f32 %v580_v1, %v305_v51  ;;  %v582_v5 = vpop.f32.mrb[3].mxu1  ;;  %830 = vst [vmem:[%s1348_s6] sm:$0xff] %v537_v62  ;;  %v541_v6 = vadd.f32 %v540_v3, %v265_v57  ;;  %v542_v7 = vpop.f32.mrb[3].mxu0 }
 0x10e   : > { %847 = vst [vmem:[%s1348_s6 + $0x88] sm:$0xff] %v579_v0  ;;  %v583_v8 = vadd.f32 %v582_v5, %v305_v51  ;;  %831 = vst [vmem:[%s1348_s6 + $0x8] sm:$0xff] %v539_v2  ;;  %v543_v9 = vadd.f32 %v542_v7, %v265_v57  ;;  %v295_v5 = vpop.permute.xlu0 %294 }
 0x10f   : > { %v1009_v10 = vmul.f32 -1.442695, %v581_v4  ;;  %832 = vst [vmem:[%s1348_s6 + $0x10] sm:$0xff] %v541_v6 }
 0x110   : > { %v1010_v11 = vmul.f32 -1.442695, %v583_v8  ;;  %833 = vst [vmem:[%s1348_s6 + $0x18] sm:$0xff] %v543_v9 }
 0x111   : > { %1116 = vpow2.f32 %v1009_v10 }
 0x112   : > { %1118 = vpow2.f32 %v1010_v11  ;;  %v546_v13 = vpop.f32.mrb[4].mxu0  ;;  %v586_v14 = vpop.f32.mrb[4].mxu1 }
 0x113   : > { %v547_v15 = vadd.f32 %v546_v13, %v270_v50  ;;  %v587_v16 = vadd.f32 %v586_v14, %v310_v53  ;;  %v548_v17 = vpop.f32.mrb[5].mxu0  ;;  %v588_v18 = vpop.f32.mrb[5].mxu1 }
 0x114   : > { %v549_v19 = vadd.f32 %v548_v17, %v270_v50  ;;  %v589_v20 = vadd.f32 %v588_v18, %v310_v53  ;;  %v550_v21 = vpop.f32.mrb[6].mxu0  ;;  %v590_v22 = vpop.f32.mrb[6].mxu1 }
 0x115   : > { %834 = vst [vmem:[%s1348_s6 + $0x20] sm:$0xff] %v547_v15  ;;  %v1011_v23 = vmul.f32 -1.442695, %v587_v16  ;;  %v551_v24 = vadd.f32 %v550_v21, %v275_v12  ;;  %v591_v25 = vadd.f32 %v590_v22, %v315_v47  ;;  %v552_v26 = vpop.f32.mrb[7].mxu0  ;;  %v592_v27 = vpop.f32.mrb[7].mxu1 }
 0x116   : > { %835 = vst [vmem:[%s1348_s6 + $0x28] sm:$0xff] %v549_v19  ;;  %v1012_v28 = vmul.f32 -1.442695, %v589_v20  ;;  %v553_v29 = vadd.f32 %v552_v26, %v275_v12  ;;  %v593_v30 = vadd.f32 %v592_v27, %v315_v47 }
 0x117   : > { %1120 = vpow2.f32 %v1011_v23  ;;  %836 = vst [vmem:[%s1348_s6 + $0x30] sm:$0xff] %v551_v24  ;;  %v1013_v31 = vmul.f32 -1.442695, %v591_v25 }
 0x118   : > { %1122 = vpow2.f32 %v1012_v28  ;;  %837 = vst [vmem:[%s1348_s6 + $0x38] sm:$0xff] %v553_v29  ;;  %v1014_v32 = vmul.f32 -1.442695, %v593_v30 }
 0x119   : > { %1124 = vpow2.f32 %v1013_v31 }
 0x11a   : > { %1126 = vpow2.f32 %v1014_v32  ;;  %v556_v34 = vpop.f32.mrb[8].mxu0  ;;  %v596_v35 = vpop.f32.mrb[8].mxu1 }
 0x11b   : > { %v1117_v36 = vpop.eup %1116  ;;  %v557_v37 = vadd.f32 %v556_v34, %v1338_v52  ;;  %v597_v38 = vadd.f32 %v596_v35, %v1336_v48  ;;  %v558_v39 = vpop.f32.mrb[9].mxu0 }
 0x11c   : > { %v598_v40 = vpop.f32.mrb[9].mxu1  ;;  %v1119_v41 = vpop.eup %1118  ;;  %v736_v42 = vadd.f32 1.0, %v1117_v36  ;;  %v559_v43 = vadd.f32 %v558_v39, %v1338_v52 }
 0x11d   : > { %v599_v44 = vadd.f32 %v598_v40, %v1336_v48  ;;  %v560_v45 = vpop.f32.mrb[10].mxu0  ;;  %v600_v46 = vpop.f32.mrb[10].mxu1  ;;  %v737_v47 = vadd.f32 1.0, %v1119_v41  ;;  %838 = vst [vmem:[%s1348_s6 + $0x40] sm:$0xff] %v557_v37  ;;  %v1015_v49 = vmul.f32 -1.442695, %v597_v38 }
 0x11e   : > { %v561_v50 = vadd.f32 %v560_v45, %v285_v33  ;;  %v601_v51 = vadd.f32 %v600_v46, %v1342_v55  ;;  %v562_v53 = vpop.f32.mrb[11].mxu0  ;;  %v602_v56 = vpop.f32.mrb[11].mxu1  ;;  %1128 = vrcp.f32 %v736_v42  ;;  %839 = vst [vmem:[%s1348_s6 + $0x48] sm:$0xff] %v559_v43 }
 0x11f   : > { %v1016_v57 = vmul.f32 -1.442695, %v599_v44  ;;  %v563_v58 = vadd.f32 %v562_v53, %v285_v33  ;;  %v603_v52 = vadd.f32 %v602_v56, %v1342_v55  ;;  %1130 = vrcp.f32 %v737_v47 }
 0x120   : > { %840 = vst [vmem:[%s1348_s6 + $0x50] sm:$0xff] %v561_v50  ;;  %v1017_v48 = vmul.f32 -1.442695, %v601_v51  ;;  %1132 = vpow2.f32 %v1015_v49 }
 0x121   : > { %841 = vst [vmem:[%s1348_s6 + $0x58] sm:$0xff] %v563_v58  ;;  %v1018_v59 = vmul.f32 -1.442695, %v603_v52  ;;  %v1121_v60 = vpop.eup %1120  ;;  %1134 = vpow2.f32 %v1016_v57 }
 0x122   : > { %v1123_v61 = vpop.eup %1122  ;;  %v738_v62 = vadd.f32 1.0, %v1121_v60  ;;  %1136 = vpow2.f32 %v1017_v48  ;;  %v566_v63 = vpop.f32.mrb[12].mxu0 }
 0x123   : > { %v1125_v0 = vpop.eup %1124  ;;  %v739_v1 = vadd.f32 1.0, %v1123_v61  ;;  %1138 = vpow2.f32 %v1018_v59  ;;  %v567_v2 = vadd.f32 %v566_v63, %v1340_v54  ;;  %v568_v55 = vpop.f32.mrb[13].mxu0 }
 0x124   : > { %v1127_v3 = vpop.eup %1126  ;;  %1140 = vrcp.f32 %v738_v62  ;;  %v740_v4 = vadd.f32 1.0, %v1125_v0  ;;  %v569_v6 = vadd.f32 %v568_v55, %v1340_v54  ;;  %v570_v7 = vpop.f32.mrb[14].mxu0 }
 0x125   : > { %1142 = vrcp.f32 %v739_v1  ;;  %v741_v8 = vadd.f32 1.0, %v1127_v3  ;;  %842 = vst [vmem:[%s1348_s6 + $0x60] sm:$0xff] %v567_v2  ;;  %v571_v9 = vadd.f32 %v570_v7, %v295_v5  ;;  %v572_v10 = vpop.f32.mrb[15].mxu0 }
 0x126   : > { %1144 = vrcp.f32 %v740_v4  ;;  %843 = vst [vmem:[%s1348_s6 + $0x68] sm:$0xff] %v569_v6  ;;  %v573_v11 = vadd.f32 %v572_v10, %v295_v5 }
 0x127   : > { %1146 = vrcp.f32 %v741_v8  ;;  %844 = vst [vmem:[%s1348_s6 + $0x70] sm:$0xff] %v571_v9 }
 0x128   : > { %v1129_v12 = vpop.eup %1128  ;;  %845 = vst [vmem:[%s1348_s6 + $0x78] sm:$0xff] %v573_v11 }
 0x129   : > { %v1131_v13 = vpop.eup %1130  ;;  %848 = vst [vmem:[%s1348_s6 + $0x90] sm:$0xff] %v1129_v12 }
 0x12a   : > { %v1133_v14 = vpop.eup %1132  ;;  %849 = vst [vmem:[%s1348_s6 + $0x98] sm:$0xff] %v1131_v13 }
 0x12b   : > { %v1135_v54 = vpop.eup %1134  ;;  %v742_v15 = vadd.f32 1.0, %v1133_v14 }
 0x12c   : > { %v1137_v16 = vpop.eup %1136  ;;  %v743_v17 = vadd.f32 1.0, %v1135_v54 }
 0x12d   : > { %v1139_v18 = vpop.eup %1138  ;;  %1148 = vrcp.f32 %v742_v15  ;;  %v744_v19 = vadd.f32 1.0, %v1137_v16 }
 0x12e   : > { %v1141_v20 = vpop.eup %1140  ;;  %1150 = vrcp.f32 %v743_v17  ;;  %v745_v21 = vadd.f32 1.0, %v1139_v18 }
 0x12f   : > { %v1143_v22 = vpop.eup %1142  ;;  %850 = vst [vmem:[%s1348_s6 + $0xa0] sm:$0xff] %v1141_v20  ;;  %1152 = vrcp.f32 %v744_v19 }
 0x130   : > { %v1145_v23 = vpop.eup %1144  ;;  %851 = vst [vmem:[%s1348_s6 + $0xa8] sm:$0xff] %v1143_v22  ;;  %1154 = vrcp.f32 %v745_v21 }
 0x131   : > { %v1147_v24 = vpop.eup %1146  ;;  %852 = vst [vmem:[%s1348_s6 + $0xb0] sm:$0xff] %v1145_v23 }
 0x132   : > { %853 = vst [vmem:[%s1348_s6 + $0xb8] sm:$0xff] %v1147_v24 }
 0x137   : > { %v1149_v25 = vpop.eup %1148 }
 0x138   : > { %v1151_v26 = vpop.eup %1150  ;;  %854 = vst [vmem:[%s1348_s6 + $0xc0] sm:$0xff] %v1149_v25 }
 0x139   : > { %v1153_v27 = vpop.eup %1152  ;;  %855 = vst [vmem:[%s1348_s6 + $0xc8] sm:$0xff] %v1151_v26 }
 0x13a   : > { %v1155_v28 = vpop.eup %1154  ;;  %856 = vst [vmem:[%s1348_s6 + $0xd0] sm:$0xf] %v1153_v27 }
 0x13b   : > { %857 = vst [vmem:[%s1348_s6 + $0xd8] sm:$0xf] %v1155_v28 }
 0x13c PF: > { %s13_s14 = sadd.s32 1, %s1178_s14   ;;  %s1399_s12 = smov %s1174_s13 }
 0x13d   : > { %p10_p5 = scmp.ge.s32.totalorder %s13_s14, 4   ;;  %s1400_s13 = smov %s1402_s15 }
 0x13f   :  { %12 = sbr.rel (!%p10_p5) target bundleno = 2 (0x2), region = 62 }

// kernel: prealign_forward.7
= control target key start
LH: loop header
LB: loop body
LE: loop exit
PB: predicated region body
PF: predicated region fallthrough
CT: control target
= control target key end

     0   :  { %s626_s12 = smov 0   ;;  %s628_s13 = smov 0   ;;  %s695_s0 = inlined_call_operand.vmem [shape: bf16[16,144], index: 0, kind: input, shape index: {}]   ;;  %s696_s1 = inlined_call_operand.vmem [shape: bf16[2,144,256], index: 1, kind: input, shape index: {}]   ;;  %s697_s2 = inlined_call_operand.vmem [shape: f32[16,1], index: 2, kind: input, shape index: {}]   ;;  %s698_s3 = inlined_call_operand.vmem [shape: f32[2,16,256], index: 3, kind: output, shape index: {}]  }
   0x1   :  { %s630_s14 = smov 0  }
   0x2 LB: > { %s25_s15 = sadd.s32 1, %s599_s13  ;;  %p496_p0 = scmp.ge.s32.totalorder %s603_s14, 1  ;;  %s603_s14 = sphi %s630_s14, %s13_s14   ;;  %s599_s13 = sphi %s628_s13, %s700_s13   ;;  %s595_s12 = sphi %s626_s12, %s699_s12  }
   0x3   : > { %p27_p1 = scmp.ge.s32.totalorder %s25_s15, 2  ;;  %p158_p2 = scmp.lt.s32.totalorder %s603_s14, 3 }
   0x5   : > { %s702_s15 = smov (%p27_p1, %s25_s15), 0  ;;  %p159_p3 = pnand %p496_p0, %p158_p2 }
   0x6   : > { %p191_p4 = scmp.lt.s32.totalorder (!%p159_p3), %s595_s12, 1  ;;  %vm342_vm0 = vcmask (!%p159_p3), 130048   ;;  %v580_v0 = vld [vmem:[%s695_s0 + $0x4] ss:$8 sps:$4 sm:$0xff] (!%p159_p3)   ;;  %v605_v2 = vmov (!%p159_p3), 0  }
   0x7   : > { %162 = sbr.rel (%p159_p3) target bundleno = 276 (0x114), region = 32  ;;  %v231_v1 = vld [vmem:[%s697_s2] sm:$0xff] (!%p159_p3)  ;;  %550 = vset.pattern.permute.xlu0 (!%p159_p3), %v605_v2  ;;  %520 = vmatprep.mubr.msk.bf16.mxu0 (!%p159_p3), %vm342_vm0, %v580_v0  ;;  %v232_v3 = vld [vmem:[%s697_s2 + $0x8] sm:$0xff] (!%p159_p3) }
   0x8   : > { %235 = vperm.xlu0 (!%p159_p3), %550, %v231_v1   ;;  %v578_v22 = vld [vmem:[%s695_s0] ss:$8 sps:$4 sm:$0xff] (!%p159_p3)  }
   0xc   : > { %240 = vperm.xlu0 (!%p159_p3), %550, %v232_v3  }
   0xe   : > { %s704_s12 = smov (!%p191_p4, %s595_s12), 1 }
   0xf   : > { %s524_s20 = smul.u32 144, %s704_s12  ;;  %s523_s28 = sshll.u32 %s704_s12, 5 }
  0x10   : > { %s208_s4 = scalar_lea.vmem %s698_s3, %s523_s28 }
  0x11   : > { %s659_s25 = scalar_lea.vmem %s696_s1, %s524_s20 }
  0x12   : > { %v551_v4 = vld [vmem:[%s659_s25 + $0x4] ss:$8 sps:$4 sm:$0xff]   ;;  %v553_v5 = vld [vmem:[%s659_s25] ss:$8 sps:$4 sm:$0xff]   ;;  %v554_v6 = vld [vmem:[%s659_s25 + $0x14] ss:$8 sps:$4 sm:$0xff]  }
  0x13   : > { %346 = vmatprep.subr.bf16.mxu0 %v551_v4  ;;  %v556_v7 = vld [vmem:[%s659_s25 + $0x10] ss:$8 sps:$4 sm:$0xff]   ;;  %v557_v8 = vld [vmem:[%s659_s25 + $0x24] ss:$8 sps:$4 sm:$0xff]   ;;  %v559_v9 = vld [vmem:[%s659_s25 + $0x20] ss:$8 sps:$4 sm:$0xff]  }
  0x14   : > { %347 = vmatpush1.bf16.msra.mxu0 %v553_v5  ;;  %v560_v10 = vld [vmem:[%s659_s25 + $0x34] ss:$8 sps:$4 sm:$0xff]   ;;  %v562_v11 = vld [vmem:[%s659_s25 + $0x30] ss:$8 sps:$4 sm:$0xff]   ;;  %v563_v12 = vld [vmem:[%s659_s25 + $0x44] ss:$8 sps:$4 sm:$0xff]  }
  0x15   : > { %348 = vmatprep.subr.bf16.mxu0 %v554_v6  ;;  %v565_v13 = vld [vmem:[%s659_s25 + $0x40] ss:$8 sps:$4 sm:$0xff]   ;;  %v566_v14 = vld [vmem:[%s659_s25 + $0x54] ss:$8 sps:$4 sm:$0xff]   ;;  %v568_v15 = vld [vmem:[%s659_s25 + $0x50] ss:$8 sps:$4 sm:$0xff]  }
  0x16   : > { %v569_v16 = vld [vmem:[%s659_s25 + $0x64] ss:$8 sps:$4 sm:$0xff]   ;;  %v571_v17 = vld [vmem:[%s659_s25 + $0x60] ss:$8 sps:$4 sm:$0xff]   ;;  %v572_v18 = vld [vmem:[%s659_s25 + $0x74] ss:$8 sps:$4 sm:$0xff]  }
  0x17   : > { %v574_v19 = vld [vmem:[%s659_s25 + $0x70] ss:$8 sps:$4 sm:$0xff]   ;;  %v575_v20 = vld [vmem:[%s659_s25 + $0x84] ss:$8 sps:$4 sm:$0xff]   ;;  %v577_v21 = vld [vmem:[%s659_s25 + $0x80] ss:$8 sps:$4 sm:$0xff]  }
  0x18   : > { %349 = vmatpush1.bf16.msra.mxu0 %v556_v7 }
  0x19   : > { %350 = vmatprep.subr.bf16.mxu0 %v557_v8 }
  0x1c   : > { %351 = vmatpush1.bf16.msra.mxu0 %v559_v9 }
  0x1d   : > { %352 = vmatprep.subr.bf16.mxu0 %v560_v10 }
  0x20   : > { %353 = vmatpush1.bf16.msra.mxu0 %v562_v11 }
  0x21   : > { %354 = vmatprep.subr.bf16.mxu0 %v563_v12 }
  0x24   : > { %355 = vmatpush1.bf16.msra.mxu0 %v565_v13 }
  0x25   : > { %356 = vmatprep.subr.bf16.mxu0 %v566_v14 }
  0x28   : > { %357 = vmatpush1.bf16.msra.mxu0 %v568_v15 }
  0x29   : > { %358 = vmatprep.subr.bf16.mxu0 %v569_v16 }
  0x2c   : > { %359 = vmatpush1.bf16.msra.mxu0 %v571_v17 }
  0x2d   : > { %360 = vmatprep.subr.bf16.mxu0 %v572_v18 }
  0x30   : > { %361 = vmatpush1.bf16.msra.mxu0 %v574_v19 }
  0x31   : > { %362 = vmatprep.subr.bf16.mxu0 %v575_v20 }
  0x34   : > { %363 = vmatpush1.bf16.msra.mxu0 %v577_v21 }
  0x37   : > { %379 = vmatmul.mubr.bf16.vlgmr.msra.gmra.mrb[0].mxu0 %v578_v22 }
  0x87   : > { %v236_v23 = vpop.permute.xlu0 %235 }
  0x8b   : > { %v241_v27 = vpop.permute.xlu0 %240 }
 0x10a   : > { %v380_v24 = vpop.f32.mrb[0].mxu0 }
 0x10b   : > { %v381_v25 = vadd.f32 %v380_v24, %v236_v23  ;;  %v382_v26 = vpop.f32.mrb[1].mxu0 }
 0x10c   : > { %v383_v28 = vadd.f32 %v382_v26, %v236_v23  ;;  %v384_v29 = vpop.f32.mrb[2].mxu0 }
 0x10d   : > { %vm389_vm1 = vcmp.ge.f32.partialorder %v381_v25, 0.0  ;;  %v393_v30 = vmul.f32 0.1, %v381_v25  ;;  %v385_v31 = vadd.f32 %v384_v29, %v241_v27  ;;  %v386_v32 = vpop.f32.mrb[3].mxu0 }
 0x10e   : > { %vm390_vm2 = vcmp.ge.f32.partialorder %v383_v28, 0.0  ;;  %v394_v33 = vmul.f32 0.1, %v383_v28  ;;  %v387_v34 = vadd.f32 %v386_v32, %v241_v27 }
 0x10f   : > { %v397_v35 = vsel %vm389_vm1, %v381_v25, %v393_v30  ;;  %vm391_vm3 = vcmp.ge.f32.partialorder %v385_v31, 0.0  ;;  %v395_v36 = vmul.f32 0.1, %v385_v31 }
 0x110   : > { %401 = vst [vmem:[%s208_s4] sm:$0xff] %v397_v35  ;;  %v398_v37 = vsel %vm390_vm2, %v383_v28, %v394_v33  ;;  %vm392_vm4 = vcmp.ge.f32.partialorder %v387_v34, 0.0  ;;  %v396_v38 = vmul.f32 0.1, %v387_v34 }
 0x111   : > { %402 = vst [vmem:[%s208_s4 + $0x8] sm:$0xff] %v398_v37  ;;  %v399_v39 = vsel %vm391_vm3, %v385_v31, %v395_v36 }
 0x112   : > { %403 = vst [vmem:[%s208_s4 + $0x10] sm:$0xff] %v399_v39  ;;  %v400_v40 = vsel %vm392_vm4, %v387_v34, %v396_v38 }
 0x113   : > { %404 = vst [vmem:[%s208_s4 + $0x18] sm:$0xff] %v400_v40 }
 0x114 PF: > { %s13_s14 = sadd.s32 1, %s603_s14   ;;  %s699_s12 = smov %s599_s13 }
 0x115   : > { %p10_p5 = scmp.ge.s32.totalorder %s13_s14, 4   ;;  %s700_s13 = smov %s702_s15 }
 0x117   :  { %12 = sbr.rel (!%p10_p5) target bundleno = 2 (0x2), region = 62 }

</bundles_post_ra>
